<compile_context>
chip_gen: v5e
topology: v5e:2x2
jax: 0.10.0
libtpu: 0.0.40
codegen_flags: <defaults>
</compile_context>

<pallas_src>
import jax
import jax.numpy as jnp
from jax.experimental import pallas as pl
from jax.experimental.pallas import tpu as pltpu


# ----------------------------------------------------------------------------
# small helpers
# ----------------------------------------------------------------------------

def _round_up(x, m):
    return ((x + m - 1) // m) * m


def _compiler_params(**kw):
    cls = getattr(pltpu, "CompilerParams", None)
    if cls is None:  # older jax spelling
        cls = getattr(pltpu, "TPUCompilerParams")
    return cls(**kw)


def _maybe_cost_estimate(flops, bytes_accessed):
    if hasattr(pl, "CostEstimate"):
        return {"cost_estimate": pl.CostEstimate(
            flops=int(flops), transcendentals=0, bytes_accessed=int(bytes_accessed))}
    return {}


# ----------------------------------------------------------------------------
# Pallas kernels
# ----------------------------------------------------------------------------

def _conv_affine_relu_kernel(patches_ref, w_ref, scale_ref, shift_ref, out_ref):
    """BasicConv2d (frozen/eval): Conv2d(bias=False) + folded BatchNorm2d + ReLU.

    patches_ref: (tm, K)  bf16 im2col rows
    w_ref:       (K, OCp) bf16 (OC zero-padded to a multiple of 128)
    scale/shift: (1, OCp) f32 folded running-stat BN
    out_ref:     (tm, OCp) f32  (lane-dense, 128-wide store)
    """
    y = jnp.dot(patches_ref[...], w_ref[...], preferred_element_type=jnp.float32)
    out_ref[...] = jnp.maximum(y * scale_ref[...] + shift_ref[...], 0.0)


def _head_kernel(x_ref, w_ref, b_ref, drop_ref, gamma_ref, beta_ref, out_ref):
    """AdaptiveAvgPool2d(1) + F.relu + flatten + Linear + Dropout(0.5) + BatchNorm1d.

    x_ref:   (N, H*W, C) f32 feature map (natural NHWC layout, no host transpose)
    w_ref:   (C, Ep) bf16 (E zero-padded to 128)
    b/gamma/beta: (1, Ep) f32
    drop_ref: (N, Ep) f32 inverted-dropout multiplier in {0, 2} (ones in eval)
    out_ref: (N, Ep) f32
    """
    pooled = jnp.mean(x_ref[...], axis=1)                 # AdaptiveAvgPool2d(1)
    feats = jnp.maximum(pooled, 0.0)                      # F.relu (flatten is implicit)
    y = jnp.dot(feats.astype(jnp.bfloat16), w_ref[...],
                preferred_element_type=jnp.float32) + b_ref[...]
    y = y * drop_ref[...]                                 # Dropout(p=0.5), inverted scaling
    # BatchNorm1d (training mode, batch stats), one-pass variance E[y^2]-E[y]^2.
    mean = jnp.mean(y, axis=0, keepdims=True)
    var = jnp.maximum(jnp.mean(y * y, axis=0, keepdims=True) - mean * mean, 0.0)
    y = (y - mean) * jax.lax.rsqrt(var + 1e-5)
    out_ref[...] = y * gamma_ref[...] + beta_ref[...]
    # TODO(synk): BatchNorm1d running-stat update (momentum=0.01) is a training
    # side effect and is not materialized here.


# ----------------------------------------------------------------------------
# wrappers
# ----------------------------------------------------------------------------

def conv_bn_relu(x, w, scale, shift, *, stride=1, padding=0, tm=256):
    """x: (N, H, W, Cin) f32 NHWC; w: (KH, KW, Cin, OC); scale/shift: (OC,)."""
    N, H, W, C = x.shape
    KH, KW, _, OC = w.shape
    if padding:
        x = jnp.pad(x, ((0, 0), (padding, padding), (padding, padding), (0, 0)))
    Hp, Wp = x.shape[1], x.shape[2]
    OH = (Hp - KH) // stride + 1
    OW = (Wp - KW) // stride + 1
    M = N * OH * OW
    K = KH * KW * C

    # TODO(synk): im2col is still materialized in plain JAX; fusing the KH*KW
    # shifted windows into the BlockSpec pipeline would cut HBM traffic further.
    cols = []
    for dy in range(KH):
        for dx in range(KW):
            cols.append(x[:, dy:dy + stride * OH:stride, dx:dx + stride * OW:stride, :])
    patches = jnp.concatenate(cols, axis=-1).reshape(M, K).astype(jnp.bfloat16)

    tm_eff = min(tm, _round_up(M, 8))            # tile rows (multiple of 8)
    Mp = _round_up(M, tm_eff)
    OCp = _round_up(max(OC, 128), 128)           # lane-dense output / full MXU tile

    patches = jnp.pad(patches, ((0, Mp - M), (0, 0)))
    w2 = jnp.pad(w.reshape(K, OC), ((0, 0), (0, OCp - OC))).astype(jnp.bfloat16)
    scale_p = jnp.pad(scale, (0, OCp - OC)).reshape(1, OCp).astype(jnp.float32)
    shift_p = jnp.pad(shift, (0, OCp - OC)).reshape(1, OCp).astype(jnp.float32)

    flops = 2 * Mp * K * OCp
    bytes_accessed = patches.size * 2 + w2.size * 2 + 2 * OCp * 4 + Mp * OCp * 4

    out = pl.pallas_call(
        _conv_affine_relu_kernel,
        out_shape=jax.ShapeDtypeStruct((Mp, OCp), jnp.float32),
        grid=(Mp // tm_eff,),
        in_specs=[
            pl.BlockSpec((tm_eff, K), lambda i: (i, 0)),
            pl.BlockSpec((K, OCp), lambda i: (0, 0)),
            pl.BlockSpec((1, OCp), lambda i: (0, 0)),
            pl.BlockSpec((1, OCp), lambda i: (0, 0)),
        ],
        out_specs=pl.BlockSpec((tm_eff, OCp), lambda i: (i, 0)),
        compiler_params=_compiler_params(
            dimension_semantics=("parallel",),
            vmem_limit_bytes=32 * 1024 * 1024,
        ),
        **_maybe_cost_estimate(flops, bytes_accessed),
    )(patches, w2, scale_p, shift_p)
    return out[:M, :OC].reshape(N, OH, OW, OC)


def pool_embed_bn(x, fc_w, fc_b, bn_g, bn_b, drop_mask):
    """x: (N, H, W, C) f32 -> (N, E). Fused pool + relu + linear + dropout + BN1d."""
    N, H, W, C = x.shape
    E = fc_w.shape[1]
    Ep = _round_up(max(E, 128), 128)
    x3 = x.reshape(N, H * W, C)
    w_p = jnp.pad(fc_w, ((0, 0), (0, Ep - E))).astype(jnp.bfloat16)
    b_p = jnp.pad(fc_b, (0, Ep - E)).reshape(1, Ep).astype(jnp.float32)
    g_p = jnp.pad(bn_g, (0, Ep - E)).reshape(1, Ep).astype(jnp.float32)
    be_p = jnp.pad(bn_b, (0, Ep - E)).reshape(1, Ep).astype(jnp.float32)

    out = pl.pallas_call(
        _head_kernel,
        out_shape=jax.ShapeDtypeStruct((N, Ep), jnp.float32),
        grid=(1,),
        in_specs=[
            pl.BlockSpec((N, H * W, C), lambda i: (0, 0, 0)),
            pl.BlockSpec((C, Ep), lambda i: (0, 0)),
            pl.BlockSpec((1, Ep), lambda i: (0, 0)),
            pl.BlockSpec((N, Ep), lambda i: (0, 0)),
            pl.BlockSpec((1, Ep), lambda i: (0, 0)),
            pl.BlockSpec((1, Ep), lambda i: (0, 0)),
        ],
        out_specs=pl.BlockSpec((N, Ep), lambda i: (0, 0)),
        compiler_params=_compiler_params(
            dimension_semantics=("arbitrary",),
            vmem_limit_bytes=32 * 1024 * 1024,
        ),
    )(x3, w_p, b_p, drop_mask, g_p, be_p)
    return out[:, :E]


# ----------------------------------------------------------------------------
# Encoder (deterministic synthetic parameters)
# ----------------------------------------------------------------------------

def _fold_bn(gamma, beta, running_mean, running_var, eps=1e-3):
    scale = gamma * jax.lax.rsqrt(running_var + eps)
    shift = beta - running_mean * scale
    return scale, shift


def init_params(key, in_ch=4, feat_ch=32, embed_size=16):
    ks = jax.random.split(key, 8)

    def conv_block(kw, km, cin, cout):
        return {
            "w": 0.1 * jax.random.normal(kw, (3, 3, cin, cout), jnp.float32),
            "gamma": jnp.ones((cout,), jnp.float32),
            "beta": jnp.zeros((cout,), jnp.float32),
            "running_mean": 0.05 * jax.random.normal(km, (cout,), jnp.float32),
            "running_var": jnp.ones((cout,), jnp.float32),
        }

    return {
        "conv1": conv_block(ks[0], ks[1], in_ch, 16),
        "conv2": conv_block(ks[2], ks[3], 16, 16),
        "conv3": conv_block(ks[4], ks[5], 16, feat_ch),
        "fc_w": 0.1 * jax.random.normal(ks[6], (feat_ch, embed_size), jnp.float32),
        "fc_b": 0.01 * jax.random.normal(ks[7], (embed_size,), jnp.float32),
        "bn_g": jnp.ones((embed_size,), jnp.float32),
        "bn_b": jnp.zeros((embed_size,), jnp.float32),
    }


def encoder_forward(params, images_nchw, dropout_key, train=True):
    x = jnp.transpose(images_nchw, (0, 2, 3, 1)).astype(jnp.float32)  # NCHW -> NHWC
    # TODO(synk): the real torchvision InceptionV3 backbone is ~94 BasicConv2d /
    # mixed blocks at 299x299; here it is a scaled-down stem with identical
    # per-block semantics (Conv2d bias=False + frozen eval-mode BatchNorm2d
    # folded to scale/shift + ReLU, then AdaptiveAvgPool2d(1); the backbone
    # Dropout is identity in eval mode).
    for name, stride, padding in (("conv1", 2, 0), ("conv2", 1, 0), ("conv3", 1, 1)):
        blk = params[name]
        scale, shift = _fold_bn(blk["gamma"], blk["beta"],
                                blk["running_mean"], blk["running_var"], eps=1e-3)
        x = conv_bn_relu(x, blk["w"], scale, shift, stride=stride, padding=padding)

    N = x.shape[0]
    E = params["fc_w"].shape[1]
    Ep = _round_up(max(E, 128), 128)
    if train:
        keep = jax.random.bernoulli(dropout_key, 0.5, (N, Ep))
        drop_mask = keep.astype(jnp.float32) * 2.0      # inverted dropout, p=0.5
    else:
        drop_mask = jnp.ones((N, Ep), jnp.float32)

    return pool_embed_bn(x, params["fc_w"], params["fc_b"],
                         params["bn_g"], params["bn_b"], drop_mask)


if __name__ == "__main__":
    key = jax.random.PRNGKey(0)
    k_img, k_par, k_drop = jax.random.split(key, 3)
    images = jax.random.normal(k_img, (2, 4, 16, 16), jnp.float32)  # NCHW like PyTorch
    params = init_params(k_par, in_ch=4, feat_ch=32, embed_size=16)

    out = encoder_forward(params, images, dropout_key=k_drop, train=True)
    out = jax.block_until_ready(out)

    assert out.shape == (2, 16), out.shape
    assert bool(jnp.all(jnp.isfinite(out)))
    print("KERNEL_OK")
</pallas_src>

<mosaic_0001>
module attributes {stable_mosaic.version = 11 : i64} {
  func.func @_conv_affine_relu_kernel(%arg0: i32, %arg1: memref<104x36xbf16, #tpu.memory_space<vmem>>, %arg2: memref<36x128xbf16, #tpu.memory_space<vmem>>, %arg3: memref<1x128xf32, #tpu.memory_space<vmem>>, %arg4: memref<1x128xf32, #tpu.memory_space<vmem>>, %arg5: memref<104x128xf32, #tpu.memory_space<vmem>>) attributes {dimension_semantics = [#tpu.dimension_semantics<parallel>], iteration_bounds = array<i64: 1>, scalar_prefetch = 0 : i64, scratch_operands = 0 : i64, tpu.core_type = #tpu.core_type<tc>, window_params = [{transform_indices = @transform_0, window_bounds = array<i64: 104, 36>}, {pipeline_mode = #tpu.pipeline_mode<synchronous>, transform_indices = @transform_1, window_bounds = array<i64: 36, 128>}, {pipeline_mode = #tpu.pipeline_mode<synchronous>, transform_indices = @transform_2, window_bounds = array<i64: 1, 128>}, {pipeline_mode = #tpu.pipeline_mode<synchronous>, transform_indices = @transform_3, window_bounds = array<i64: 1, 128>}, {transform_indices = @transform_4, window_bounds = array<i64: 104, 128>}]} {
    %c0 = arith.constant 0 : index
    %c0_0 = arith.constant 0 : index
    %0 = vector.load %arg1[%c0, %c0_0] : memref<104x36xbf16, #tpu.memory_space<vmem>>, vector<104x36xbf16>
    %c0_1 = arith.constant 0 : index
    %c0_2 = arith.constant 0 : index
    %1 = vector.load %arg2[%c0_1, %c0_2] : memref<36x128xbf16, #tpu.memory_space<vmem>>, vector<36x128xbf16>
    %cst = arith.constant dense<0.000000e+00> : vector<104x128xf32>
    %2 = tpu.matmul %0, %1, %cst {dimension_numbers = #tpu.dot_dimension_numbers<[1], [0], [0], [1], [0, 0, 1, 1], [], []>} : vector<104x36xbf16>, vector<36x128xbf16>, vector<104x128xf32> -> vector<104x128xf32>
    %c0_3 = arith.constant 0 : index
    %c0_4 = arith.constant 0 : index
    %3 = vector.load %arg3[%c0_3, %c0_4] : memref<1x128xf32, #tpu.memory_space<vmem>>, vector<1x128xf32>
    %4 = vector.broadcast %3 : vector<1x128xf32> to vector<104x128xf32>
    %5 = arith.mulf %2, %4 : vector<104x128xf32>
    %c0_5 = arith.constant 0 : index
    %c0_6 = arith.constant 0 : index
    %6 = vector.load %arg4[%c0_5, %c0_6] : memref<1x128xf32, #tpu.memory_space<vmem>>, vector<1x128xf32>
    %7 = vector.broadcast %6 : vector<1x128xf32> to vector<104x128xf32>
    %8 = arith.addf %5, %7 : vector<104x128xf32>
    %cst_7 = arith.constant 0.000000e+00 : f32
    %9 = vector.broadcast %cst_7 : f32 to vector<104x128xf32>
    %10 = arith.maximumf %8, %9 : vector<104x128xf32>
    %c0_8 = arith.constant 0 : index
    %c0_9 = arith.constant 0 : index
    %11 = vector.load %arg5[%c0_8, %c0_9] : memref<104x128xf32, #tpu.memory_space<vmem>>, vector<104x128xf32>
    tpu.vector_store %arg5[%c0_8, %c0_9], %10 {strides = array<i32>} : memref<104x128xf32, #tpu.memory_space<vmem>>, vector<104x128xf32>,
    return
  }
  func.func @transform_0(%arg0: i32) -> (i32, i32) {
    %c0_i32 = arith.constant 0 : i32
    %c0_i32_0 = arith.constant 0 : i32
    return %arg0, %c0_i32 : i32, i32
  }
  func.func @transform_1(%arg0: i32) -> (i32, i32) {
    %c0_i32 = arith.constant 0 : i32
    %c0_i32_0 = arith.constant 0 : i32
    %c0_i32_1 = arith.constant 0 : i32
    return %c0_i32, %c0_i32_0 : i32, i32
  }
  func.func @transform_2(%arg0: i32) -> (i32, i32) {
    %c0_i32 = arith.constant 0 : i32
    %c0_i32_0 = arith.constant 0 : i32
    %c0_i32_1 = arith.constant 0 : i32
    return %c0_i32, %c0_i32_0 : i32, i32
  }
  func.func @transform_3(%arg0: i32) -> (i32, i32) {
    %c0_i32 = arith.constant 0 : i32
    %c0_i32_0 = arith.constant 0 : i32
    %c0_i32_1 = arith.constant 0 : i32
    return %c0_i32, %c0_i32_0 : i32, i32
  }
  func.func @transform_4(%arg0: i32) -> (i32, i32) {
    %c0_i32 = arith.constant 0 : i32
    %c0_i32_0 = arith.constant 0 : i32
    return %arg0, %c0_i32 : i32, i32
  }
}

</mosaic_0001>

<bundles_post_ra>
// kernel: tpu_custom_call.1
= control target key start
LH: loop header
LB: loop body
LE: loop exit
PB: predicated region body
PF: predicated region fallthrough
CT: control target
= control target key end

     0   :  { %vm107_vm0 = vcmask 1041408   ;;  %s393_s0 = inlined_call_operand.vmem [shape: bf16[104,36], index: 0, kind: input, shape index: {}]   ;;  %s394_s1 = inlined_call_operand.vmem [shape: bf16[36,128], index: 1, kind: input, shape index: {}]   ;;  %s395_s2 = inlined_call_operand.vmem [shape: f32[1,128], index: 2, kind: input, shape index: {}]   ;;  %s396_s3 = inlined_call_operand.vmem [shape: f32[1,128], index: 3, kind: input, shape index: {}]   ;;  %s397_s4 = inlined_call_operand.hbm [shape: f32[104,128], index: 4, kind: output, shape index: {}]  }
   0x1   :  { %v36_v0 = vld [vmem:[%s394_s1 + $0x10] sm:$0x3] }
   0x2   :  { %v79_v1 = vunpack.c.l.b16 %v36_v0 }
   0x4   :  { %v82_v2 = vpack.c.b16 %v79_v1, %v79_v1 }
   0x5   :  { %9 = vsyncpa [#allocation3], 0  ;;  %v278_v4 = vld [vmem:[%s394_s1 + $0x8] sm:$0xff]  ;;  %v277_v5 = vld [vmem:[%s394_s1] sm:$0xff]  ;;  %vm85_vm1 = vcmask 293888   ;;  %s220_s13 = sshll.u32 %s397_s4, 4  ;;  %s221_s13 = int_to_ptr.hbm [resolvable:$true] %s220_s13 }
   0x6   :  { %v109_v3 = vsel %vm107_vm0, %v82_v2, 0  ;;  %v271_v6 = vld [vmem:[%s393_s0] sm:$0xff]  ;;  %v273_v7 = vld [vmem:[%s393_s0 + $0x10] sm:$0xff]  ;;  %v276_v8 = vld [vmem:[%s393_s0 + $0x28] sm:$0xff]  ;;  %s320_s14 = smov 128   ;;  %s321_s15 = smov 8  }
   0x7   :  { %116 = vmatpush.bf16.msra.mxu0 %v109_v3  ;;  %279 = vmatpush.bf16.msra.mxu1 %v109_v3  ;;  %v275_v9 = vld [vmem:[%s393_s0 + $0x20] sm:$0xff]  ;;  %v31_v10 = vld [vmem:[%s393_s0 + $0x30] sm:$0xf]  ;;  %v272_v12 = vld [vmem:[%s393_s0 + $0x8] sm:$0xff] }
   0x8   :  { %281 = vmatpush.bf16.msra.mxu3 %v109_v3  ;;  %280 = vmatpush.bf16.msra.mxu2 %v109_v3  ;;  %v62_v11 = vunpack.c.l.b16 %v31_v10  ;;  %v274_v13 = vld [vmem:[%s393_s0 + $0x18] sm:$0xff]  ;;  %v291_v15 = vld [vmem:[%s395_s2] ss:$0 sm:$0xff]  ;;  %s319_s0 = smov [#allocation2]  }
   0x9   :  { %v292_v16 = vld [vmem:[%s396_s3] ss:$0 sm:$0xff]  ;;  %s218_s2 = sshll.u32 %s319_s0, 4  ;;  %s219_s2 = int_to_ptr.vmem [resolvable:$true] %s218_s2 }
   0xa   :  { %v69_v14 = vpack.c.b16 %v62_v11, %v62_v11 }
   0xb   :  { %117 = vmatpush.bf16.msra.mxu0 %v278_v4  ;;  %282 = vmatpush.bf16.msra.mxu1 %v278_v4 }
   0xc   :  { %284 = vmatpush.bf16.msra.mxu3 %v278_v4  ;;  %283 = vmatpush.bf16.msra.mxu2 %v278_v4 }
   0xf   :  { %118 = vmatpush.bf16.msra.mxu0 %v277_v5  ;;  %285 = vmatpush.bf16.msra.mxu1 %v277_v5 }
  0x10   :  { %287 = vmatpush.bf16.msra.mxu3 %v277_v5  ;;  %286 = vmatpush.bf16.msra.mxu2 %v277_v5 }
  0x12   :  { %264 = vmatmul.msk.bf16.vlgmr.msra.gmra.mxu0 %vm85_vm1, %v271_v6  ;;  %266 = vmatmul.msk.bf16.vlgmr.msra.gmra.mxu1 %vm85_vm1, %v273_v7 }
  0x13   :  { %269 = vmatmul.msk.bf16.vlgmr.msra.gmra.mxu3 %vm85_vm1, %v276_v8  ;;  %268 = vmatmul.msk.bf16.vlgmr.msra.gmra.mxu2 %vm85_vm1, %v275_v9 }
  0x22   :  { %265 = vmatmul.msk.bf16.gmra.mxu0 %vm85_vm1, %v272_v12  ;;  %267 = vmatmul.msk.bf16.gmra.mxu1 %vm85_vm1, %v274_v13 }
  0x23   :  { %270 = vmatmul.msk.bf16.gmra.mxu3 %vm85_vm1, %v69_v14 }
  0x8f   :  { %v120_v17 = vpop.f32.mrf.mxu0  ;;  %v130_v18 = vpop.f32.mrf.mxu1 }
  0x90   :  { %v158_v19 = vmul.f32 %v291_v15, %v120_v17  ;;  %v162_v20 = vmul.f32 %v291_v15, %v130_v18 }
  0x92   :  { %v175_v21 = vadd.f32 %v292_v16, %v158_v19  ;;  %v179_v22 = vadd.f32 %v292_v16, %v162_v20 }
  0x94   :  { %v188_v23 = vmax.f32 %v175_v21, 0.0  ;;  %v192_v24 = vmax.f32 %v179_v22, 0.0 }
  0x96   :  { %201 = vst [vmem:[#allocation2] sm:$0xff] %v188_v23  ;;  %v145_v25 = vpop.f32.mrf.mxu3  ;;  %v140_v26 = vpop.f32.mrf.mxu2 }
  0x97   :  { %205 = vst [vmem:[#allocation2 + $0x20] sm:$0xff] %v192_v24  ;;  %v168_v27 = vmul.f32 %v291_v15, %v145_v25  ;;  %v122_v28 = vpop.f32.mrf.mxu0  ;;  %v132_v29 = vpop.f32.mrf.mxu1  ;;  %v166_v30 = vmul.f32 %v291_v15, %v140_v26 }
  0x98   :  { %v159_v31 = vmul.f32 %v291_v15, %v122_v28  ;;  %v163_v32 = vmul.f32 %v291_v15, %v132_v29 }
  0x99   :  { %v185_v33 = vadd.f32 %v292_v16, %v168_v27  ;;  %v183_v34 = vadd.f32 %v292_v16, %v166_v30 }
  0x9a   :  { %v176_v35 = vadd.f32 %v292_v16, %v159_v31  ;;  %v180_v36 = vadd.f32 %v292_v16, %v163_v32 }
  0x9b   :  { %v198_v37 = vmax.f32 %v185_v33, 0.0  ;;  %v196_v40 = vmax.f32 %v183_v34, 0.0 }
  0x9c   :  { %v189_v38 = vmax.f32 %v176_v35, 0.0  ;;  %v193_v39 = vmax.f32 %v180_v36, 0.0 }
  0x9d   :  { %211 = vst [vmem:[#allocation2 + $0x50] sm:$0xff] %v198_v37 }
  0x9e   :  { %202 = vst [vmem:[#allocation2 + $0x8] sm:$0xff] %v189_v38  ;;  %v147_v41 = vpop.f32.mrf.mxu3  ;;  %v142_v42 = vpop.f32.mrf.mxu2 }
  0x9f   :  { %206 = vst [vmem:[#allocation2 + $0x28] sm:$0xff] %v193_v39  ;;  %v169_v43 = vmul.f32 %v291_v15, %v147_v41  ;;  %v125_v44 = vpop.f32.mrf.mxu0  ;;  %v135_v45 = vpop.f32.mrf.mxu1  ;;  %v167_v46 = vmul.f32 %v291_v15, %v142_v42 }
  0xa0   :  { %209 = vst [vmem:[#allocation2 + $0x40] sm:$0xff] %v196_v40  ;;  %v160_v47 = vmul.f32 %v291_v15, %v125_v44  ;;  %v164_v48 = vmul.f32 %v291_v15, %v135_v45 }
  0xa1   :  { %v186_v49 = vadd.f32 %v292_v16, %v169_v43  ;;  %v184_v50 = vadd.f32 %v292_v16, %v167_v46 }
  0xa2   :  { %v177_v51 = vadd.f32 %v292_v16, %v160_v47  ;;  %v181_v52 = vadd.f32 %v292_v16, %v164_v48 }
  0xa3   :  { %v199_v53 = vmax.f32 %v186_v49, 0.0  ;;  %v197_v56 = vmax.f32 %v184_v50, 0.0 }
  0xa4   :  { %v190_v54 = vmax.f32 %v177_v51, 0.0  ;;  %v194_v55 = vmax.f32 %v181_v52, 0.0 }
  0xa5   :  { %212 = vst [vmem:[#allocation2 + $0x58] sm:$0xff] %v199_v53 }
  0xa6   :  { %203 = vst [vmem:[#allocation2 + $0x10] sm:$0xff] %v190_v54  ;;  %v150_v57 = vpop.f32.mrf.mxu3 }
  0xa7   :  { %207 = vst [vmem:[#allocation2 + $0x30] sm:$0xff] %v194_v55  ;;  %v170_v58 = vmul.f32 %v291_v15, %v150_v57  ;;  %v127_v59 = vpop.f32.mrf.mxu0  ;;  %v137_v60 = vpop.f32.mrf.mxu1 }
  0xa8   :  { %210 = vst [vmem:[#allocation2 + $0x48] sm:$0xff] %v197_v56  ;;  %v161_v61 = vmul.f32 %v291_v15, %v127_v59  ;;  %v165_v62 = vmul.f32 %v291_v15, %v137_v60 }
  0xa9   :  { %v187_v63 = vadd.f32 %v292_v16, %v170_v58 }
  0xaa   :  { %v178_v0 = vadd.f32 %v292_v16, %v161_v61  ;;  %v182_v1 = vadd.f32 %v292_v16, %v165_v62 }
  0xab   :  { %v200_v2 = vmax.f32 %v187_v63, 0.0 }
  0xac   :  { %v191_v3 = vmax.f32 %v178_v0, 0.0  ;;  %v195_v4 = vmax.f32 %v182_v1, 0.0 }
  0xad   :  { %213 = vst [vmem:[#allocation2 + $0x60] sm:$0xff] %v200_v2 }
  0xae   :  { %204 = vst [vmem:[#allocation2 + $0x18] sm:$0xff] %v191_v3  ;;  %v152_v5 = vpop.f32.mrf.mxu3 }
  0xaf   :  { %208 = vst [vmem:[#allocation2 + $0x38] sm:$0xff] %v195_v4 }
  0xb0   :  { %226 = dma.vmem_to_hbm [thread:$0]  %s219_s2, 1664, %s221_s13, [#allocation3], %s320_s14, %s320_s14, %s321_s15  }
  0xb1   :  { %317 = dma.done.wait [#allocation3], 1664  }
  0xb2   :  { %318 = vsyncadd [#allocation3], 4294965632 }
  0xb3   :  { %231 = vsyncpa [#allocation3], 1 }

</bundles_post_ra>
